<compile_context>
chip_gen: v7x
topology: tpu7x:2x2x1
jax: 0.10.0
libtpu: 0.0.40
codegen_flags: <defaults>
</compile_context>

<pallas_src>
import functools

import jax
import jax.numpy as jnp
from jax.experimental import pallas as pl
from jax.experimental.pallas import tpu as pltpu


# ----------------------------------------------------------------------------
# helpers
# ----------------------------------------------------------------------------
def _pick_tile(total, target, granularity=8):
    """Largest multiple-of-`granularity` divisor of `total` that is <= target.

    Falls back to the full extent (a full-extent block is always legal)."""
    t = min(target, total)
    t -= t % granularity
    while t >= granularity:
        if total % t == 0:
            return t
        t -= granularity
    return total


# ----------------------------------------------------------------------------
# Kernel 1: SE gate scores (tiled global-average-pool reduction + tiny FC head)
# ----------------------------------------------------------------------------
def _se_gate_kernel(inv_hw, hr_ref, lr_ref, w1h_ref, w1l_ref, w2_ref,
                    scores_ref, sum_hr, sum_lr):
    # hr_ref / lr_ref : (1, TILE_HW, C) blocks of one image (bf16 or f32)
    # w1h/w1l         : (C, hidden) f32 (torch fc[0].weight.T split hr/lr halves)
    # w2              : (hidden, 2) f32
    # scores_ref      : (1, 1, 2) f32 output, resident across the spatial tiles
    # sum_hr / sum_lr : (1, C) f32 VMEM scratch accumulators
    t = pl.program_id(1)

    @pl.when(t == 0)
    def _():
        sum_hr[...] = jnp.zeros_like(sum_hr)
        sum_lr[...] = jnp.zeros_like(sum_lr)

    # Partial spatial sums for this tile, accumulated in f32 (bf16 inputs are
    # upcast before the reduction).
    sum_hr[...] += jnp.sum(hr_ref[0].astype(jnp.float32), axis=0, keepdims=True)
    sum_lr[...] += jnp.sum(lr_ref[0].astype(jnp.float32), axis=0, keepdims=True)

    @pl.when(t == pl.num_programs(1) - 1)
    def _():
        # Global average pool: 1/HW uses the *global* HW, not the tile size.
        y_hr = sum_hr[...] * inv_hw                                      # (1, C)
        y_lr = sum_lr[...] * inv_hw                                      # (1, C)
        # fc: Linear(2C -> 2C/r, no bias) -> ReLU -> Linear(-> 2, no bias).
        # The channel concat is folded into the weight split: no lane concat.
        z = (jnp.dot(y_hr, w1h_ref[...], preferred_element_type=jnp.float32)
             + jnp.dot(y_lr, w1l_ref[...], preferred_element_type=jnp.float32))
        z = jnp.maximum(z, 0.0)                                          # (1, hidden)
        s = jnp.dot(z, w2_ref[...], preferred_element_type=jnp.float32)  # (1, 2)
        # 2-way softmax == sigmoid of the score difference.
        p0 = 1.0 / (1.0 + jnp.exp(s[:, 1:2] - s[:, 0:1]))                # (1, 1)
        p1 = 1.0 - p0
        scores_ref[...] = jnp.concatenate([p0, p1], axis=1).reshape(1, 1, 2)


def se_gate_scores(hr, lr, w1, w2, *, tile_hw=1024):
    """hr, lr: (B, HW, C) channels-last features. Returns gate scores (B, 2) f32."""
    B, HW, C = hr.shape
    hidden = w1.shape[1]
    t_hw = _pick_tile(HW, tile_hw)
    n_t = HW // t_hw
    feat_spec = pl.BlockSpec((1, t_hw, C), lambda b, t: (b, t, 0))
    w1h, w1l = w1[:C], w1[C:]                  # tiny (C, hidden) halves
    scores = pl.pallas_call(
        functools.partial(_se_gate_kernel, 1.0 / HW),
        out_shape=jax.ShapeDtypeStruct((B, 1, 2), jnp.float32),
        grid=(B, n_t),
        in_specs=[feat_spec, feat_spec,
                  pl.BlockSpec((C, hidden), lambda b, t: (0, 0)),
                  pl.BlockSpec((C, hidden), lambda b, t: (0, 0)),
                  pl.BlockSpec((hidden, 2), lambda b, t: (0, 0))],
        out_specs=pl.BlockSpec((1, 1, 2), lambda b, t: (b, 0, 0)),
        scratch_shapes=[pltpu.VMEM((1, C), jnp.float32),
                        pltpu.VMEM((1, C), jnp.float32)],
        compiler_params=pltpu.CompilerParams(
            dimension_semantics=("parallel", "arbitrary")),
    )(hr, lr, w1h, w1l, w2)
    return scores.reshape(B, 2)


# ----------------------------------------------------------------------------
# Kernel 2: gated blend  out = p0 * hr + p1 * lr  (lane-dense, fully parallel)
# ----------------------------------------------------------------------------
def _se_blend_kernel(scores_ref, hr_ref, lr_ref, out_ref):
    # scores_ref : (B, 2) f32 in SMEM (whole array; read as per-batch scalars)
    # hr/lr/out  : (1, TILE, LANES) blocks of the flattened feature map
    b = pl.program_id(0)
    p_hr = scores_ref[b, 0]
    p_lr = scores_ref[b, 1]
    blended = (p_hr * hr_ref[0].astype(jnp.float32)
               + p_lr * lr_ref[0].astype(jnp.float32))
    out_ref[0] = blended.astype(out_ref.dtype)


def se_blend(hr, lr, scores, *, tile_rows=2048):
    """hr, lr: (B, HW, C); scores: (B, 2) f32. Returns fused (B, HW, C)."""
    B, HW, C = hr.shape
    # Lane-dense view: fold channels into 128-wide lanes when possible so the
    # HBM-bound blend uses full-width (unmasked) vector loads and stores.
    lanes = 128 if (HW * C) % 128 == 0 else C
    L = (HW * C) // lanes
    hr_f = hr.reshape(B, L, lanes)              # free row-major reshape
    lr_f = lr.reshape(B, L, lanes)
    t_l = _pick_tile(L, tile_rows)
    n_t = L // t_l
    blk = pl.BlockSpec((1, t_l, lanes), lambda b, t: (b, t, 0))
    out = pl.pallas_call(
        _se_blend_kernel,
        out_shape=jax.ShapeDtypeStruct((B, L, lanes), hr.dtype),
        grid=(B, n_t),
        in_specs=[pl.BlockSpec(memory_space=pltpu.MemorySpace.SMEM), blk, blk],
        out_specs=blk,
        compiler_params=pltpu.CompilerParams(
            dimension_semantics=("parallel", "parallel")),
    )(scores, hr_f, lr_f)
    return out.reshape(B, HW, C)


def tfcos_se_fuse(hr, lr, w1, w2):
    """One FPN level of the TFCOS fusion loop (SELayer gated blend).

    hr, lr : (B, HW, C) channels-last features (bf16 or f32).
    w1     : (2C, 2C // reduction) f32  == torch fc[0].weight.T
    w2     : (2C // reduction, 2) f32   == torch fc[2].weight.T
    """
    scores = se_gate_scores(hr, lr, w1, w2)
    return se_blend(hr, lr, scores), scores


# ----------------------------------------------------------------------------
# Plain-JAX glue mirroring TFCOS helpers + reference
# ----------------------------------------------------------------------------
def preprocess_image(images_nchw, pixel_mean, pixel_std):
    """normalize + nearest 0.5x downsample (F.interpolate scale_factor=0.5)."""
    hr = (images_nchw - pixel_mean[None, :, None, None]) / pixel_std[None, :, None, None]
    lr = hr[:, :, ::2, ::2]                                  # nearest, factor 2
    return hr, lr


def compute_locations_per_level(h, w, stride):
    shifts_x = jnp.arange(0, w * stride, step=stride, dtype=jnp.float32)
    shifts_y = jnp.arange(0, h * stride, step=stride, dtype=jnp.float32)
    shift_y, shift_x = jnp.meshgrid(shifts_y, shifts_x, indexing="ij")
    locs = jnp.stack((shift_x.reshape(-1), shift_y.reshape(-1)), axis=1)
    return locs + stride // 2


def ref_fuse(hr, lr, w1, w2):
    """Pure-JAX reference reproducing the torch semantics (channels-last)."""
    hr32 = hr.astype(jnp.float32)
    lr32 = lr.astype(jnp.float32)
    # cat([hr, lr], dim=channel) followed by global avg-pool == concat of means.
    y = jnp.concatenate([hr32.mean(axis=1), lr32.mean(axis=1)], axis=1)  # (B, 2C)
    z = jnp.maximum(y @ w1, 0.0)
    p = jax.nn.softmax(z @ w2, axis=1)                                   # (B, 2)
    out = p[:, 0, None, None] * hr32 + p[:, 1, None, None] * lr32
    return out, p


if __name__ == "__main__":
    key = jax.random.PRNGKey(0)
    k_img, k_hr, k_lr, k_w1, k_w2 = jax.random.split(key, 5)

    # Small shapes: B=2, per-branch C=64 (SE in_channel 2C=128), 16x16 spatial.
    B, C, H, W = 2, 64, 16, 16
    HW = H * W
    reduction = 16
    in_channel = 2 * C                       # 128
    hidden = in_channel // reduction         # 8
    stride = 8                               # one FPN level

    # --- preprocess_image glue (normalize + nearest downsample) ---
    images = jax.random.uniform(k_img, (B, 3, 2 * H, 2 * W), jnp.float32) * 255.0
    pixel_mean = jnp.array([103.53, 116.28, 123.675], jnp.float32)
    pixel_std = jnp.array([1.0, 1.0, 1.0], jnp.float32)
    hr_images, lr_images = preprocess_image(images, pixel_mean, pixel_std)

    # --- synthetic backbone features, channels-last & bf16 end-to-end ---
    hr_feature = jax.random.normal(k_hr, (B, HW, C), jnp.float32).astype(jnp.bfloat16)
    lr_feature = jax.random.normal(k_lr, (B, HW, C), jnp.float32).astype(jnp.bfloat16)

    # --- SELayer weights (Linear(128->8), Linear(8->2), no bias), stored (in, out) = W.T ---
    w1 = jax.random.normal(k_w1, (in_channel, hidden), jnp.float32) / jnp.sqrt(
        jnp.float32(in_channel))
    w2 = jax.random.normal(k_w2, (hidden, 2), jnp.float32) / jnp.sqrt(
        jnp.float32(hidden))

    # --- Pallas SE-gated fusion (small tiles here to exercise the tiling) ---
    scores = se_gate_scores(hr_feature, lr_feature, w1, w2, tile_hw=64)
    fr_feature = se_blend(hr_feature, lr_feature, scores, tile_rows=32)
    fr_feature = jax.block_until_ready(fr_feature)
    scores = jax.block_until_ready(scores)

    # --- compute_locations glue ---
    locations = jax.block_until_ready(compute_locations_per_level(H, W, stride))

    # --- correctness check vs. pure-JAX torch-semantics reference ---
    fr_ref, p_ref = ref_fuse(hr_feature, lr_feature, w1, w2)
    assert fr_feature.shape == (B, HW, C)
    assert scores.shape == (B, 2)
    assert locations.shape == (HW, 2)
    score_err = float(jnp.max(jnp.abs(scores - p_ref)))
    out_err = float(jnp.max(jnp.abs(fr_feature.astype(jnp.float32) - fr_ref)))
    assert score_err < 1e-4, f"gate score max abs error {score_err}"
    # fused output is stored in bf16 -> tolerance is set by bf16 quantization
    assert out_err < 5e-2, f"fused feature max abs error {out_err}"

    print("KERNEL_OK")
</pallas_src>

<mosaic_0001>
module attributes {stable_mosaic.version = 11 : i64} {
  func.func @_se_gate_kernel(%arg0: i32, %arg1: i32, %arg2: memref<1x64x64xbf16, #tpu.memory_space<vmem>>, %arg3: memref<1x64x64xbf16, #tpu.memory_space<vmem>>, %arg4: memref<64x8xf32, #tpu.memory_space<vmem>>, %arg5: memref<64x8xf32, #tpu.memory_space<vmem>>, %arg6: memref<8x2xf32, #tpu.memory_space<vmem>>, %arg7: memref<1x1x2xf32, #tpu.memory_space<vmem>>, %arg8: memref<1x64xf32, #tpu.memory_space<vmem>>, %arg9: memref<1x64xf32, #tpu.memory_space<vmem>>) attributes {dimension_semantics = [#tpu.dimension_semantics<parallel>, #tpu.dimension_semantics<arbitrary>], iteration_bounds = array<i64: 2, 4>, scalar_prefetch = 0 : i64, scratch_operands = 2 : i64, tpu.core_type = #tpu.core_type<tc>, window_params = [{transform_indices = @transform_0, window_bounds = array<i64: 1, 64, 64>}, {transform_indices = @transform_1, window_bounds = array<i64: 1, 64, 64>}, {pipeline_mode = #tpu.pipeline_mode<synchronous>, transform_indices = @transform_2, window_bounds = array<i64: 64, 8>}, {pipeline_mode = #tpu.pipeline_mode<synchronous>, transform_indices = @transform_3, window_bounds = array<i64: 64, 8>}, {pipeline_mode = #tpu.pipeline_mode<synchronous>, transform_indices = @transform_4, window_bounds = array<i64: 8, 2>}, {transform_indices = @transform_5, window_bounds = array<i64: 1, 1, 2>}]} {
    %c0_i32 = arith.constant 0 : i32
    %0 = arith.cmpi eq, %arg1, %c0_i32 : i32
    %1 = arith.extui %0 : i1 to i32
    %c0_i32_0 = arith.constant 0 : i32
    %2 = arith.cmpi ne, %1, %c0_i32_0 : i32
    scf.if %2 {
      %cst_16 = arith.constant 0.000000e+00 : f32
      %22 = vector.broadcast %cst_16 : f32 to vector<1x64xf32>
      %c0_17 = arith.constant 0 : index
      %c0_18 = arith.constant 0 : index
      %23 = vector.load %arg8[%c0_17, %c0_18] : memref<1x64xf32, #tpu.memory_space<vmem>>, vector<1x64xf32>
      tpu.vector_store %arg8[%c0_17, %c0_18], %22 {strides = array<i32>} : memref<1x64xf32, #tpu.memory_space<vmem>>, vector<1x64xf32>,
      %cst_19 = arith.constant 0.000000e+00 : f32
      %24 = vector.broadcast %cst_19 : f32 to vector<1x64xf32>
      %c0_20 = arith.constant 0 : index
      %c0_21 = arith.constant 0 : index
      %25 = vector.load %arg9[%c0_20, %c0_21] : memref<1x64xf32, #tpu.memory_space<vmem>>, vector<1x64xf32>
      tpu.vector_store %arg9[%c0_20, %c0_21], %24 {strides = array<i32>} : memref<1x64xf32, #tpu.memory_space<vmem>>, vector<1x64xf32>,
    } else {
    }
    %c0 = arith.constant 0 : index
    %c0_1 = arith.constant 0 : index
    %3 = vector.load %arg8[%c0, %c0_1] : memref<1x64xf32, #tpu.memory_space<vmem>>, vector<1x64xf32>
    %c0_2 = arith.constant 0 : index
    %c0_3 = arith.constant 0 : index
    %c0_4 = arith.constant 0 : index
    %4 = vector.load %arg2[%c0_2, %c0_3, %c0_4] : memref<1x64x64xbf16, #tpu.memory_space<vmem>>, vector<1x64x64xbf16>
    %5 = vector.shape_cast %4 : vector<1x64x64xbf16> to vector<64x64xbf16>
    %6 = arith.extf %5 : vector<64x64xbf16> to vector<64x64xf32>
    %cst = arith.constant dense<0.000000e+00> : vector<64xf32>
    %7 = vector.multi_reduction <add>, %6, %cst [0] : vector<64x64xf32> to vector<64xf32>
    %8 = vector.shape_cast %7 : vector<64xf32> to vector<1x64xf32>
    %9 = arith.addf %3, %8 : vector<1x64xf32>
    %c0_5 = arith.constant 0 : index
    %c0_6 = arith.constant 0 : index
    %10 = vector.load %arg8[%c0_5, %c0_6] : memref<1x64xf32, #tpu.memory_space<vmem>>, vector<1x64xf32>
    tpu.vector_store %arg8[%c0_5, %c0_6], %9 {strides = array<i32>} : memref<1x64xf32, #tpu.memory_space<vmem>>, vector<1x64xf32>,
    %c0_7 = arith.constant 0 : index
    %c0_8 = arith.constant 0 : index
    %11 = vector.load %arg9[%c0_7, %c0_8] : memref<1x64xf32, #tpu.memory_space<vmem>>, vector<1x64xf32>
    %c0_9 = arith.constant 0 : index
    %c0_10 = arith.constant 0 : index
    %c0_11 = arith.constant 0 : index
    %12 = vector.load %arg3[%c0_9, %c0_10, %c0_11] : memref<1x64x64xbf16, #tpu.memory_space<vmem>>, vector<1x64x64xbf16>
    %13 = vector.shape_cast %12 : vector<1x64x64xbf16> to vector<64x64xbf16>
    %14 = arith.extf %13 : vector<64x64xbf16> to vector<64x64xf32>
    %cst_12 = arith.constant dense<0.000000e+00> : vector<64xf32>
    %15 = vector.multi_reduction <add>, %14, %cst_12 [0] : vector<64x64xf32> to vector<64xf32>
    %16 = vector.shape_cast %15 : vector<64xf32> to vector<1x64xf32>
    %17 = arith.addf %11, %16 : vector<1x64xf32>
    %c0_13 = arith.constant 0 : index
    %c0_14 = arith.constant 0 : index
    %18 = vector.load %arg9[%c0_13, %c0_14] : memref<1x64xf32, #tpu.memory_space<vmem>>, vector<1x64xf32>
    tpu.vector_store %arg9[%c0_13, %c0_14], %17 {strides = array<i32>} : memref<1x64xf32, #tpu.memory_space<vmem>>, vector<1x64xf32>,
    %c3_i32 = arith.constant 3 : i32
    %19 = arith.cmpi eq, %arg1, %c3_i32 : i32
    %20 = arith.extui %19 : i1 to i32
    %c0_i32_15 = arith.constant 0 : i32
    %21 = arith.cmpi ne, %20, %c0_i32_15 : i32
    scf.if %21 {
      %c0_16 = arith.constant 0 : index
      %c0_17 = arith.constant 0 : index
      %22 = vector.load %arg8[%c0_16, %c0_17] : memref<1x64xf32, #tpu.memory_space<vmem>>, vector<1x64xf32>
      %cst_18 = arith.constant 3.906250e-03 : f32
      %23 = vector.broadcast %cst_18 : f32 to vector<1x64xf32>
      %24 = arith.mulf %22, %23 : vector<1x64xf32>
      %c0_19 = arith.constant 0 : index
      %c0_20 = arith.constant 0 : index
      %25 = vector.load %arg9[%c0_19, %c0_20] : memref<1x64xf32, #tpu.memory_space<vmem>>, vector<1x64xf32>
      %cst_21 = arith.constant 3.906250e-03 : f32
      %26 = vector.broadcast %cst_21 : f32 to vector<1x64xf32>
      %27 = arith.mulf %25, %26 : vector<1x64xf32>
      %c0_22 = arith.constant 0 : index
      %c0_23 = arith.constant 0 : index
      %28 = vector.load %arg4[%c0_22, %c0_23] : memref<64x8xf32, #tpu.memory_space<vmem>>, vector<64x8xf32>
      %cst_24 = arith.constant dense<0.000000e+00> : vector<1x8xf32>
      %29 = tpu.matmul %24, %28, %cst_24 {dimension_numbers = #tpu.dot_dimension_numbers<[1], [0], [0], [1], [0, 0, 1, 1], [], []>} : vector<1x64xf32>, vector<64x8xf32>, vector<1x8xf32> -> vector<1x8xf32>
      %c0_25 = arith.constant 0 : index
      %c0_26 = arith.constant 0 : index
      %30 = vector.load %arg5[%c0_25, %c0_26] : memref<64x8xf32, #tpu.memory_space<vmem>>, vector<64x8xf32>
      %cst_27 = arith.constant dense<0.000000e+00> : vector<1x8xf32>
      %31 = tpu.matmul %27, %30, %cst_27 {dimension_numbers = #tpu.dot_dimension_numbers<[1], [0], [0], [1], [0, 0, 1, 1], [], []>} : vector<1x64xf32>, vector<64x8xf32>, vector<1x8xf32> -> vector<1x8xf32>
      %32 = arith.addf %29, %31 : vector<1x8xf32>
      %cst_28 = arith.constant 0.000000e+00 : f32
      %33 = vector.broadcast %cst_28 : f32 to vector<1x8xf32>
      %34 = arith.maximumf %32, %33 : vector<1x8xf32>
      %c0_29 = arith.constant 0 : index
      %c0_30 = arith.constant 0 : index
      %35 = vector.load %arg6[%c0_29, %c0_30] : memref<8x2xf32, #tpu.memory_space<vmem>>, vector<8x2xf32>
      %cst_31 = arith.constant dense<0.000000e+00> : vector<1x2xf32>
      %36 = tpu.matmul %34, %35, %cst_31 {dimension_numbers = #tpu.dot_dimension_numbers<[1], [0], [0], [1], [0, 0, 1, 1], [], []>} : vector<1x8xf32>, vector<8x2xf32>, vector<1x2xf32> -> vector<1x2xf32>
      %37 = vector.extract_strided_slice %36 {offsets = [0, 1], sizes = [1, 1], strides = [1, 1]} : vector<1x2xf32> to vector<1x1xf32>
      %38 = vector.extract_strided_slice %36 {offsets = [0, 0], sizes = [1, 1], strides = [1, 1]} : vector<1x2xf32> to vector<1x1xf32>
      %39 = arith.subf %37, %38 : vector<1x1xf32>
      %40 = math.exp %39 : vector<1x1xf32>
      %cst_32 = arith.constant 1.000000e+00 : f32
      %41 = vector.broadcast %cst_32 : f32 to vector<1x1xf32>
      %42 = arith.addf %41, %40 : vector<1x1xf32>
      %cst_33 = arith.constant 1.000000e+00 : f32
      %43 = vector.broadcast %cst_33 : f32 to vector<1x1xf32>
      %44 = arith.divf %43, %42 : vector<1x1xf32>
      %cst_34 = arith.constant 1.000000e+00 : f32
      %45 = vector.broadcast %cst_34 : f32 to vector<1x1xf32>
      %46 = arith.subf %45, %44 : vector<1x1xf32>
      %47 = tpu.concatenate %44, %46 in 1 : vector<1x1xf32>, vector<1x1xf32> -> vector<1x2xf32>
      %48 = vector.shape_cast %47 : vector<1x2xf32> to vector<1x1x2xf32>
      %c0_35 = arith.constant 0 : index
      %c0_36 = arith.constant 0 : index
      %c0_37 = arith.constant 0 : index
      %49 = vector.load %arg7[%c0_35, %c0_36, %c0_37] : memref<1x1x2xf32, #tpu.memory_space<vmem>>, vector<1x1x2xf32>
      tpu.vector_store %arg7[%c0_35, %c0_36, %c0_37], %48 {strides = array<i32>} : memref<1x1x2xf32, #tpu.memory_space<vmem>>, vector<1x1x2xf32>,
    } else {
    }
    return
  }
  func.func @transform_0(%arg0: i32, %arg1: i32) -> (i32, i32, i32) {
    %c0_i32 = arith.constant 0 : i32
    %c0_i32_0 = arith.constant 0 : i32
    return %arg0, %arg1, %c0_i32 : i32, i32, i32
  }
  func.func @transform_1(%arg0: i32, %arg1: i32) -> (i32, i32, i32) {
    %c0_i32 = arith.constant 0 : i32
    %c0_i32_0 = arith.constant 0 : i32
    return %arg0, %arg1, %c0_i32 : i32, i32, i32
  }
  func.func @transform_2(%arg0: i32, %arg1: i32) -> (i32, i32) {
    %c0_i32 = arith.constant 0 : i32
    %c0_i32_0 = arith.constant 0 : i32
    %c0_i32_1 = arith.constant 0 : i32
    return %c0_i32, %c0_i32_0 : i32, i32
  }
  func.func @transform_3(%arg0: i32, %arg1: i32) -> (i32, i32) {
    %c0_i32 = arith.constant 0 : i32
    %c0_i32_0 = arith.constant 0 : i32
    %c0_i32_1 = arith.constant 0 : i32
    return %c0_i32, %c0_i32_0 : i32, i32
  }
  func.func @transform_4(%arg0: i32, %arg1: i32) -> (i32, i32) {
    %c0_i32 = arith.constant 0 : i32
    %c0_i32_0 = arith.constant 0 : i32
    %c0_i32_1 = arith.constant 0 : i32
    return %c0_i32, %c0_i32_0 : i32, i32
  }
  func.func @transform_5(%arg0: i32, %arg1: i32) -> (i32, i32, i32) {
    %c0_i32 = arith.constant 0 : i32
    %c0_i32_0 = arith.constant 0 : i32
    %c0_i32_1 = arith.constant 0 : i32
    return %arg0, %c0_i32, %c0_i32_0 : i32, i32, i32
  }
}

</mosaic_0001>

<bundles_post_ra>
// kernel: tpu_custom_call.1
= control target key start
LH: loop header
LB: loop body
LE: loop exit
PB: predicated region body
PF: predicated region fallthrough
CT: control target
= control target key end

     0   :  { %10 = vsyncpa [#allocation5], 0  ;;  %s1320_s0 = inlined_call_operand.vmem [shape: bf16[2,256,64], index: 0, kind: input, shape index: {}]   ;;  %s1321_s1 = inlined_call_operand.vmem [shape: bf16[2,256,64], index: 1, kind: input, shape index: {}]   ;;  %s1322_s2 = inlined_call_operand.vmem [shape: f32[64,8], index: 2, kind: input, shape index: {}]   ;;  %s1323_s3 = inlined_call_operand.vmem [shape: f32[64,8], index: 3, kind: input, shape index: {}]   ;;  %s1324_s4 = inlined_call_operand.vmem [shape: f32[8,2], index: 4, kind: input, shape index: {}]   ;;  %s1325_s5 = inlined_call_operand.hbm [shape: f32[2,1,2], index: 5, kind: output, shape index: {}]  }
   0x1   :  { %12 = vsyncpa [#allocation5 + $0x1], 0  ;;  %s1102_s18 = smov 0   ;;  %s1104_s19 = smov 0  }
   0x2   :  { %s1106_s20 = smov 0   ;;  %s1108_s21 = smov 0  }
   0x3   :  { %s1110_s22 = smov 0   ;;  %s1112_s23 = smov 0  }
   0x4   :  { %s1114_s24 = smov 0   ;;  %s1116_s25 = smov 0  }
   0x5 LB: > { %s743_s26 = sadd.s32 4294967295, %s1063_s25   ;;  %s744_s27 = sadd.s32 4294967294, %s1063_s25   ;;  %s1063_s25 = sphi %s1116_s25, %s18_s25   ;;  %s1059_s24 = sphi %s1114_s24, %s1337_s24   ;;  %s1055_s23 = sphi %s1112_s23, %s1336_s23   ;;  %s1051_s22 = sphi %s1110_s22, %s1335_s22   ;;  %s1047_s21 = sphi %s1108_s21, %s1334_s21   ;;  %s1043_s20 = sphi %s1106_s20, %s1333_s20   ;;  %s1039_s19 = sphi %s1104_s19, %s1332_s19   ;;  %s1035_s18 = sphi %s1102_s18, %s1331_s18  }
   0x6   : > { %s27_s28 = sadd.s32 1, %s1055_s23  ;;  %s30_s29 = sadd.s32 1, %s1059_s24 }
   0x7   : > { %p28_p0 = scmp.ge.s32.totalorder %s27_s28, 4  ;;  %p166_p1 = scmp.ne.s32.totalorder %s1043_s20, %s1039_s19 }
   0x8   : > { %p167_p2 = scmp.eq.s32.totalorder %s743_s26, 7  ;;  %p172_p4 = scmp.ne.s32.totalorder %s1039_s19, %s1035_s18 }
   0x9   : > { %s1339_s28 = smov (%p28_p0, %s27_s28), 0  ;;  %s1341_s29 = smov (!%p28_p0, %s30_s29), %s1059_s24 }
   0xa   : > { %p1151_p3 = por %p167_p2, %p166_p1  ;;  %p32_p5 = scmp.ge.s32.totalorder %s1341_s29, 2 }
   0xb   : > { %p173_p6 = scmp.eq.s32.totalorder %s744_s27, 7  ;;  %p747_p7 = scmp.ge.s32.totalorder %s1063_s25, 1 }
   0xc   : > { %p226_p8 = scmp.lt.s32.totalorder %s1063_s25, 9  ;;  %s1343_s29 = smov (%p32_p5, %s1341_s29), 0 }
   0xd   : > { %1328 = sst [smem:[#allocation7_spill]] %s1343_s29  ;;  %p1161_p9 = por %p173_p6, %p172_p4 }
   0xe   : > { %p227_p10 = pnand %p747_p7, %p226_p8  ;;  %s153_s7 = ssub.s32 %s1059_s24, %s1343_s29 }
   0xf   : > { %s156_s8 = sadd.s32 1, %s1043_s20  ;;  %p154_p11 = scmp.eq.s32.totalorder %s153_s7, 0 }
  0x10   : > { %230 = sbr.rel (%p227_p10) target bundleno = 787 (0x313), region = 40  ;;  %s264_s10 = sand.u32 (!%p227_p10), 1, %s1039_s19  }
  0x11   : > { %s1169_s9 = scalar_select %p154_p11, %s1043_s20, %s156_s8  }
  0x12   : > { %s748_s11 = sshll.u32 (!%p227_p10), %s1047_s21, 3  ;;  %p267_p12 = scmp.lt.s32.totalorder (!%p227_p10), %s1051_s22, 1 }
  0x13   : > { %p269_p13 = scmp.lt.s32.totalorder (!%p227_p10), %s748_s11, 31  ;;  %s1185_s29 = scalar_lea.vmem (!%p227_p10), [#allocation4], %s264_s10 }
  0x14   : > { %p754_p0 = scmp.ne.s32.totalorder (!%p227_p10), %s1047_s21, 0 }
  0x17   : > { %s268_s12 = scalar_select %p267_p12, %s1051_s22, 1 }
  0x18   : > { %s1345_s11 = smov (!%p269_p13, %s748_s11), 31  ;;  %289 = sbr.rel (%p754_p0) target bundleno = 31 (0x1f), region = 44 }
  0x19   : > { %s749_s13 = sshll.u32 %s268_s12, 5  ;;  %vm290_vm0 = vcmask (!%p754_p0), 516096   ;;  %v1065_v0 = vmov (!%p754_p0), 0.0  }
  0x1a   : > { %s272_s14 = sadd.s32 %s749_s13, %s1345_s11  ;;  %291 = vst.msk [vmem:[#allocation2] sm:$0x1] (!%p754_p0), %vm290_vm0, %v1065_v0  ;;  %292 = vst.msk [vmem:[#allocation3] sm:$0x1] (!%p754_p0), %vm290_vm0, %v1065_v0 }
  0x1b   : > { %s750_s15 = sshll.u32 %s272_s14, 2 }
  0x1c   : > { %s274_s26 = scalar_lea.vmem %s1320_s0, %s750_s15  ;;  %s1181_s8 = scalar_lea.vmem %s1321_s1, %s750_s15 }
  0x1f PF: > { %v763_v1 = vld [vmem:[%s274_s26] sm:$0xff]   ;;  %v794_v2 = vld [vmem:[%s274_s26 + $0x8] sm:$0xff]   ;;  %vm310_vm1 = vcmask 523264   ;;  %v795_v7 = vld [vmem:[%s274_s26 + $0x10] sm:$0xff]   ;;  %vm333_vm2 = vcmask 516096   ;;  %p755_p1 = scmp.ne.s32.totalorder %s1047_s21, 3 }
  0x20   : > { %v764_v3 = vunpack.c.l.bf16 %v763_v1  ;;  %v765_v4 = vunpack.c.h.bf16 %v763_v1  ;;  %v768_v5 = vunpack.c.l.bf16 %v794_v2  ;;  %v769_v6 = vunpack.c.h.bf16 %v794_v2  ;;  %v779_v8 = vld [vmem:[%s1181_s8] sm:$0xff]   ;;  %v797_v9 = vld [vmem:[%s1181_s8 + $0x8] sm:$0xff]   ;;  %v796_v11 = vld [vmem:[%s274_s26 + $0x18] sm:$0xff]   ;;  %s1069_s7 = smov (!%p755_p1), 1  }
  0x21   : > { %v772_v10 = vunpack.c.l.bf16 %v795_v7  ;;  %v773_v15 = vunpack.c.h.bf16 %v795_v7  ;;  %v798_v17 = vld [vmem:[%s1181_s8 + $0x10] sm:$0xff]   ;;  %v780_v19 = vunpack.c.l.bf16 %v779_v8  ;;  %v781_v20 = vunpack.c.h.bf16 %v779_v8  ;;  %v799_v30 = vld [vmem:[%s1181_s8 + $0x18] sm:$0xff]   ;;  %v293_v63 = vld [vmem:[#allocation2] sm:$0x1]  ;;  %s1070_s8 = smov (!%p755_p1), 127  }
  0x22   : > { %v311_v12 = vsel %vm310_vm1, %v764_v3, 0.0  ;;  %v312_v13 = vsel %vm310_vm1, %v765_v4, 0.0  ;;  %v314_v14 = vsel %vm310_vm1, %v768_v5, 0.0  ;;  %v316_v18 = vsel %vm310_vm1, %v769_v6, 0.0  ;;  %v335_v4 = vld [vmem:[#allocation3] sm:$0x1] }
  0x23   : > { %v313_v16 = vadd.f32 %v312_v13, %v311_v12  ;;  %v784_v21 = vunpack.c.l.bf16 %v797_v9  ;;  %v776_v22 = vunpack.c.l.bf16 %v796_v11  ;;  %v785_v24 = vunpack.c.h.bf16 %v797_v9  ;;  %v391_v7 = vld [vmem:[%s1323_s3] sm:$0xff] (!%p755_p1)  ;;  %v392_v8 = vld [vmem:[%s1323_s3 + $0x8] sm:$0xff] (!%p755_p1)  ;;  %v393_v13 = vld [vmem:[%s1323_s3 + $0x10] sm:$0xff] (!%p755_p1) }
  0x24   : > { %v318_v25 = vsel %vm310_vm1, %v772_v10, 0.0  ;;  %v788_v26 = vunpack.c.l.bf16 %v798_v17  ;;  %v352_v27 = vsel %vm310_vm1, %v780_v19, 0.0  ;;  %v353_v28 = vsel %vm310_vm1, %v781_v20, 0.0  ;;  %v383_v9 = vld [vmem:[%s1322_s2] sm:$0xff] (!%p755_p1)  ;;  %v384_v12 = vld [vmem:[%s1322_s2 + $0x8] sm:$0xff] (!%p755_p1) }
  0x25   : > { %v315_v23 = vadd.f32 %v314_v14, %v313_v16  ;;  %v354_v31 = vadd.f32 %v353_v28, %v352_v27  ;;  %v355_v32 = vsel %vm310_vm1, %v784_v21, 0.0  ;;  %v777_v33 = vunpack.c.h.bf16 %v796_v11  ;;  %v394_v14 = vld [vmem:[%s1323_s3 + $0x18] sm:$0xff] (!%p755_p1)  ;;  %v385_v16 = vld [vmem:[%s1322_s2 + $0x10] sm:$0xff] (!%p755_p1)  ;;  %v395_v21 = vld [vmem:[%s1323_s3 + $0x20] sm:$0xff] (!%p755_p1) }
  0x26   : > { %v320_v34 = vsel %vm310_vm1, %v773_v15, 0.0  ;;  %v789_v35 = vunpack.c.h.bf16 %v798_v17  ;;  %v357_v36 = vsel %vm310_vm1, %v785_v24, 0.0  ;;  %v322_v39 = vsel %vm310_vm1, %v776_v22, 0.0  ;;  %v386_v17 = vld [vmem:[%s1322_s2 + $0x18] sm:$0xff] (!%p755_p1)  ;;  %v396_v22 = vld [vmem:[%s1323_s3 + $0x28] sm:$0xff] (!%p755_p1)  ;;  %v397_v27 = vld [vmem:[%s1323_s3 + $0x30] sm:$0xff] (!%p755_p1) }
  0x27   : > { %v317_v29 = vadd.f32 %v316_v18, %v315_v23  ;;  %v356_v38 = vadd.f32 %v355_v32, %v354_v31  ;;  %v792_v40 = vunpack.c.l.bf16 %v799_v30  ;;  %v359_v41 = vsel %vm310_vm1, %v788_v26, 0.0  ;;  %v387_v23 = vld [vmem:[%s1322_s2 + $0x20] sm:$0xff] (!%p755_p1)  ;;  %v388_v24 = vld [vmem:[%s1322_s2 + $0x28] sm:$0xff] (!%p755_p1)  ;;  %v398_v28 = vld [vmem:[%s1323_s3 + $0x38] sm:$0xff] (!%p755_p1) }
  0x28   : > { %v324_v44 = vsel %vm310_vm1, %v777_v33, 0.0  ;;  %v793_v45 = vunpack.c.h.bf16 %v799_v30  ;;  %v361_v46 = vsel %vm310_vm1, %v789_v35, 0.0  ;;  %v1066_v10 = vmov (!%p755_p1), 0.0|0.0   ;;  %v390_v30 = vld [vmem:[%s1322_s2 + $0x38] sm:$0xff] (!%p755_p1) }
  0x29   : > { %v319_v37 = vadd.f32 %v318_v25, %v317_v29  ;;  %v358_v43 = vadd.f32 %v357_v36, %v356_v38  ;;  %v363_v49 = vsel %vm310_vm1, %v792_v40, 0.0  ;;  %863 = vmatprep.subr.bf16.mxu1 (!%p755_p1), %v1066_v10  ;;  %875 = vmatprep.subr.bf16.mxu0 (!%p755_p1), %v1066_v10  ;;  %v864_v11 = vpack.c.bf16 (!%p755_p1), %v392_v8, %v391_v7  ;;  %v389_v29 = vld [vmem:[%s1322_s2 + $0x30] sm:$0xff] (!%p755_p1) }
  0x2a   : > { %v365_v52 = vsel %vm310_vm1, %v793_v45, 0.0  ;;  %v876_v15 = vpack.c.bf16 (!%p755_p1), %v384_v12, %v383_v9  ;;  %vm1067_vm3 = vmmov (!%p755_p1), 0   ;;  %v1068_v18 = vmov (!%p755_p1), 0.0  }
  0x2b   : > { %v321_v42 = vadd.f32 %v320_v34, %v319_v37  ;;  %v360_v48 = vadd.f32 %v359_v41, %v358_v43  ;;  %836 = vmatprep.mubr.msk.f32.mxu1 (!%p755_p1), %vm1067_vm3, %v1068_v18  ;;  %855 = vmatprep.mubr.msk.f32.mxu0 (!%p755_p1), %vm1067_vm3, %v1068_v18  ;;  %v867_v19 = vpack.c.bf16 (!%p755_p1), %v394_v14, %v393_v13  ;;  %v546_v37 = vld [vmem:[%s1324_s4] sm:$0xff] (!%p755_p1)  ;;  %vm547_vm4 = vcmask (!%p755_p1), 64512  }
  0x2c   : > { %865 = vmatpush3.bf16.msra.mxu1 (!%p755_p1), %v864_v11  ;;  %877 = vmatpush3.bf16.msra.mxu0 (!%p755_p1), %v876_v15  ;;  %v879_v20 = vpack.c.bf16 (!%p755_p1), %v386_v17, %v385_v16  ;;  %v870_v25 = vpack.c.bf16 (!%p755_p1), %v396_v22, %v395_v21  ;;  %v882_v26 = vpack.c.bf16 (!%p755_p1), %v388_v24, %v387_v23  ;;  %vm636_vm5 = vcmask (!%p755_p1), 7168  }
  0x2d   : > { %v323_v47 = vadd.f32 %v322_v39, %v321_v42  ;;  %v362_v51 = vadd.f32 %v361_v46, %v360_v48  ;;  %866 = vmatprep.subr.bf16.mxu1 (!%p755_p1), %v1066_v10  ;;  %878 = vmatprep.subr.bf16.mxu0 (!%p755_p1), %v1066_v10  ;;  %v873_v31 = vpack.c.bf16 (!%p755_p1), %v398_v28, %v397_v27  ;;  %vm638_vm6 = vcmask (!%p755_p1), 8192  }
  0x2e   : > { %v885_v33 = vpack.c.bf16 (!%p755_p1), %v390_v30, %v389_v29 }
  0x2f   : > { %v325_v50 = vadd.f32 %v324_v44, %v323_v47  ;;  %v364_v54 = vadd.f32 %v363_v49, %v362_v51 }
  0x30   : > { %868 = vmatpush3.bf16.msra.mxu1 (!%p755_p1), %v867_v19  ;;  %880 = vmatpush3.bf16.msra.mxu0 (!%p755_p1), %v879_v20 }
  0x31   : > { %v326_v53 = vrot.slane %v325_v50, 4  ;;  %v366_v56 = vadd.f32 %v365_v52, %v364_v54  ;;  %869 = vmatprep.subr.bf16.mxu1 (!%p755_p1), %v1066_v10  ;;  %881 = vmatprep.subr.bf16.mxu0 (!%p755_p1), %v1066_v10 }
  0x33   : > { %v327_v55 = vadd.f32 %v326_v53, %v325_v50  ;;  %v367_v58 = vrot.slane %v366_v56, 4 }
  0x34   : > { %871 = vmatpush3.bf16.msra.mxu1 (!%p755_p1), %v870_v25  ;;  %883 = vmatpush3.bf16.msra.mxu0 (!%p755_p1), %v882_v26 }
  0x35   : > { %v328_v57 = vrot.slane %v327_v55, 2  ;;  %v368_v60 = vadd.f32 %v367_v58, %v366_v56  ;;  %872 = vmatprep.subr.bf16.mxu1 (!%p755_p1), %v1066_v10  ;;  %884 = vmatprep.subr.bf16.mxu0 (!%p755_p1), %v1066_v10 }
  0x37   : > { %v329_v59 = vadd.f32 %v328_v57, %v327_v55  ;;  %v369_v62 = vrot.slane %v368_v60, 2 }
  0x38   : > { %874 = vmatpush3.bf16.msra.mxu1 (!%p755_p1), %v873_v31  ;;  %886 = vmatpush3.bf16.msra.mxu0 (!%p755_p1), %v885_v33 }
  0x39   : > { %v330_v61 = vrot.slane %v329_v59, 1  ;;  %v370_v1 = vadd.f32 %v369_v62, %v368_v60  ;;  %858 = vmatprep.subr.mxu1 (!%p755_p1), %v1068_v18 }
  0x3b   : > { %v331_v0 = vadd.f32 %v330_v61, %v329_v59  ;;  %v371_v3 = vrot.slane %v370_v1, 1  ;;  %378 = sbr.rel (%p755_p1) target bundleno = 763 (0x2fb), region = 48 }
  0x3d   : > { %v332_v2 = vadd.f32 %v331_v0, %v293_v63  ;;  %v372_v5 = vadd.f32 %v371_v3, %v370_v1 }
  0x3f   : > { %334 = vst.msk [vmem:[#allocation2] sm:$0x1] %vm333_vm2, %v332_v2  ;;  %v373_v6 = vadd.f32 %v372_v5, %v335_v4 }
  0x41   : > { %374 = vst.msk [vmem:[#allocation3] sm:$0x1] %vm333_vm2, %v373_v6 }
  0x46   : > { %v379_v34 = vld [vmem:[#allocation2] sm:$0x1] }
  0x47   : > { %v380_v36 = vmul.f32 0.00390625, %v379_v34 }
  0x48   : > { %v381_v32 = vld [vmem:[#allocation3] sm:$0x1] }
  0x49   : > { %v382_v35 = vmul.f32 0.00390625, %v381_v32  ;;  %856 = vmatmul.mubr.msk.f32.vlgmr.msra.gmra.mrb[0].mxu0 %vm310_vm1, %v380_v36 }
  0x4b   : > { %837 = vmatmul.mubr.msk.f32.vlgmr.msra.gmra.mrb[0].mxu1 %vm310_vm1, %v382_v35 }
  0x4c   : > { %860 = vmatprep.mubr.msk.f32.mxu1 %vm1067_vm3, %v1068_v18  ;;  %859 = vmatpush3.msra.mxu1 %v546_v37 }
 0x11c   : > { %v541_v39 = vpop.f32.mrb[0].mxu0 }
 0x11d   : > { %v857_v42 = vpop.f32.mrb[1].mxu0 }
 0x11e   : > { %v468_v38 = vpop.f32.mrb[0].mxu1 }
 0x11f   : > { %v838_v40 = vpop.f32.mrb[1].mxu1  ;;  %v542_v41 = vadd.f32 %v541_v39, %v468_v38 }
 0x121   : > { %v545_v43 = vmax.f32 %v542_v41, 0.0 }
 0x123   : > { %861 = vmatmul.mubr.msk.f32.vlgmr.msra.gmra.mrb[2].mxu1 %vm547_vm4, %v545_v43 }
 0x1f6   : > { %v617_v44 = vpop.f32.mrb[2].mxu1 }
 0x1f7   : > { %622 = vrot.lane.b32.xlu0 %v617_v44, %s1069_s7  ;;  %v862_v45 = vpop.f32.mrb[3].mxu1 }
 0x269   : > { %v623_v46 = vpop.permute.xlu0 %622 }
 0x26a   : > { %v625_v47 = vsub.f32 %v617_v44, %v623_v46 }
 0x26c   : > { %v626_v48 = vmul.f32 1.442695, %v625_v47 }
 0x26e   : > { %965 = vpow2.f32 %v626_v48 }
 0x278   : > { %v966_v49 = vpop.eup %965 }
 0x279   : > { %v628_v50 = vadd.f32 1.0, %v966_v49 }
 0x27b   : > { %967 = vrcp.f32 %v628_v50 }
 0x285   : > { %v968_v51 = vpop.eup %967 }
 0x286   : > { %633 = vrot.lane.b32.xlu0 %v968_v51, %s1070_s8  ;;  %v631_v52 = vsub.f32 1.0, %v968_v51 }
 0x2f8   : > { %v634_v53 = vpop.permute.xlu0 %633 }
 0x2f9   : > { %v637_v54 = vsel %vm636_vm5, %v634_v53, %v631_v52 }
 0x2fa   : > { %639 = vst.msk [vmem:[%s1185_s29] sm:$0x1] %vm638_vm6, %v637_v54 }
 0x2fb PF: > { %s759_s11 = sshll.u32 %s1051_s22, 4  ;;  %s653_s15 = sshll.u32 %s1185_s29, 4  ;;  %s654_s15 = int_to_ptr.vmem [resolvable:$true] %s653_s15 }
 0x2fc   : > { %s1270_s14 = scalar_lea.hbm %s1325_s5, %s759_s11  ;;  %s641_s16 = scalar_lea.sflag [#allocation5], %s264_s10 }
 0x2fd   : > { %s969_s17 = scalar_lea.vmem %s654_s15, 16  ;;  %s1071_s26 = smov [#allocation4]  }
 0x2fe   : > { %p970_p2 = scmp.ne.s32.totalorder %s654_s15, %s969_s17  ;;  %s973_s21 = sshll.u32 %s1071_s26, 4  ;;  %s974_s21 = int_to_ptr.vmem [resolvable:$false] %s973_s21 }
 0x2ff   : > { %s975_s27 = scalar_lea.vmem %s974_s21, 32  ;;  %p976_p6 = scmp.lt.s32.totalorder %s654_s15, %s974_s21 }
 0x300   : > { %p971_p4 = pnand %p970_p2, %p1151_p3  ;;  %p977_p7 = scmp.lt.s32.totalorder %s975_s27, %s969_s17 }
 0x302   : > { %p972_p5 = pneg %p971_p4  ;;  %p978_p8 = por %p977_p7, %p976_p6 }
 0x304   : > { %p979_p10 = pnand %p978_p8, %p972_p5 }
 0x306   : > { %982 = shalt.err (!%p979_p10)
}
 0x307   : > { %s983_s22 = scalar_lea.hbm %s1270_s14, 16  ;;  %s987_s7 = scalar_lea.hbm %s1325_s5, 32 }
 0x308   : > { %p984_p11 = scmp.ne.s32.totalorder %s1270_s14, %s983_s22  ;;  %p988_p0 = scmp.lt.u32.totalorder %s1270_s14, %s1325_s5 }
 0x309   : > { %p989_p1 = scmp.lt.u32.totalorder %s987_s7, %s983_s22  ;;  %p991_p4 = scmp.lt.u32.totalorder %s983_s22, %s1270_s14 }
 0x30a   : > { %p985_p12 = pnand %p984_p11, %p1151_p3 }
 0x30b   : > { %p990_p2 = por %p989_p1, %p988_p0 }
 0x30c   : > { %p986_p13 = pneg %p985_p12 }
 0x30d   : > { %p992_p5 = por %p991_p4, %p990_p2 }
 0x30f   : > { %p993_p6 = pnand %p992_p5, %p986_p13 }
 0x311   : > { %996 = shalt.err (!%p993_p6)
}
 0x312   : > { %888 = dma.vmem_to_hbm [thread:$0]  (%p1151_p3), %s654_s15, 16, %s1270_s14, %s641_s16  }
 0x313 PF: > { %p894_p7 = scmp.ge.s32.totalorder %s1063_s25, 2  ;;  %s665_s12 = sand.u32 1, %s1035_s18  }
 0x314   : > { %s666_s13 = scalar_lea.sflag [#allocation5], %s665_s12 }
 0x315   : > { %p891_p8 = pnand %p894_p7, %p1161_p9 }
 0x317   : > { %1030 = dma.done.wait (!%p891_p8), %s666_s13, 16  }
 0x318   : > { %1032 = vsyncadd (!%p891_p8), %s666_s13, 4294967280  ;;  %s18_s25 = sadd.s32 1, %s1063_s25   ;;  %s1330_s30 = sld [smem:[#allocation7_spill]] }
 0x319   : > { %p15_p10 = scmp.ge.s32.totalorder %s18_s25, 10   ;;  %s1331_s18 = smov %s1039_s19 }
 0x31a   : > { %s1332_s19 = smov %s1043_s20  ;;  %s1333_s20 = smov %s1169_s9 }
 0x31b   : > { %s1334_s21 = smov %s1055_s23  ;;  %s1335_s22 = smov %s1059_s24 }
 0x31c   : > { %s1336_s23 = smov %s1339_s28  ;;  %17 = sbr.rel (!%p15_p10) target bundleno = 5 (0x5), region = 86 }
 0x31e   : > { %s1337_s24 = smov %s1330_s30 }
 0x323   :  { %670 = vsyncpa [#allocation5], 1 }
 0x324   :  { %672 = vsyncpa [#allocation5 + $0x1], 1 }

</bundles_post_ra>
